<compile_context>
chip_gen: v5e
topology: v5e:2x2
jax: 0.10.0
libtpu: 0.0.40
codegen_flags: <defaults>
</compile_context>

<pallas_src>
import functools
import numpy as np
import jax
import jax.numpy as jnp
from jax import lax
from jax.experimental import pallas as pl
from jax.experimental.pallas import tpu as pltpu

HIDDEN = 32
HEADS = 4
NEG_SLOPE = 0.2
NEG_BIAS = -1e30   # additive mask value; every real row has a self-loop so no row is fully masked


def _round_up(v, m):
    return (v + m - 1) // m * m


# --------------------------------------------------------------------------- linear + relu kernel
def _linear_relu_kernel(x_ref, w_ref, b_ref, o_ref):
    y = jnp.dot(x_ref[...], w_ref[...], preferred_element_type=jnp.float32)
    o_ref[...] = jnp.maximum(y + b_ref[...], 0.0).astype(o_ref.dtype)


def linear_relu(x, w, b):
    rows, fout = x.shape[0], w.shape[1]
    return pl.pallas_call(
        _linear_relu_kernel,
        out_shape=jax.ShapeDtypeStruct((rows, fout), jnp.float32),
        in_specs=[pl.BlockSpec(memory_space=pltpu.MemorySpace.VMEM)] * 3,
        out_specs=pl.BlockSpec(memory_space=pltpu.MemorySpace.VMEM),
    )(x, w, b.reshape(1, -1))


# --------------------------------------------------------------------------- GAT layer kernel
def _gat_kernel(xf_ref, xt_ref, wp_ref, attp_ref, fold_ref, adj_ref, bvec_ref, o_ref,
                *, heads, out_ch, neg_slope):
    f32 = jnp.float32
    hc = heads * out_ch
    # One lane-dense matmul for ALL heads: [n_pad, hidden] @ [hidden, heads*out_ch(=128)]
    xw_all = jnp.dot(xf_ref[...], wp_ref[...], preferred_element_type=f32)     # [n_pad, hc]
    xw_dst = jnp.dot(xt_ref[...], wp_ref[...], preferred_element_type=f32)     # [TM, hc]
    # Attention scores for all heads with one packed matmul (block-diagonal att matrix):
    #   column h      -> source score of head h
    #   column heads+h -> destination score of head h
    sc_all = jnp.dot(xw_all, attp_ref[...], preferred_element_type=f32)        # [n_pad, 2*heads]
    sc_dst = jnp.dot(xw_dst, attp_ref[...], preferred_element_type=f32)        # [TM, 2*heads]
    adj = adj_ref[...].astype(f32)                                             # [TM, n_pad] additive 0 / -1e30
    head_id = lax.broadcasted_iota(jnp.int32, (1, hc), 1) // out_ch            # lane -> head index
    tm = xt_ref.shape[0]
    acc = jnp.zeros((tm, hc), f32)
    for h in range(heads):                                                     # static unrolled (heads=4)
        a_s = sc_all[:, h:h + 1].T                                             # [1, n_pad] (sources)
        a_d = sc_dst[:, heads + h:heads + h + 1]                               # [TM, 1]   (destinations)
        e = a_d + a_s                                                          # row=dst, col=src
        e = jnp.where(e > 0, e, neg_slope * e)                                 # LeakyReLU (before mask, as PyG)
        e = e + adj                                                            # additive adjacency bias
        m = jnp.max(e, axis=1, keepdims=True)
        p = jnp.exp(e - m)
        rs = jnp.sum(p, axis=1, keepdims=True)
        alpha = p * pl.reciprocal(rs, approx=True)                             # softmax per destination row
        xw_h = jnp.where(head_id == h, xw_all, 0.0)                            # lane-mask head h (stays 128-lane dense)
        acc = acc + jnp.dot(alpha, xw_h, preferred_element_type=f32)           # [TM, hc]
    # fold [hc, out_ch] has 1/heads entries -> per-head gather + head mean in a single MXU op
    out = jnp.dot(acc, fold_ref[...], preferred_element_type=f32) + bvec_ref[...]
    o_ref[...] = jnp.maximum(out, 0.0).astype(o_ref.dtype)


def gat_layer(x, w_lin, att_src, att_dst, adj_bias, eff_bias, *, heads, out_ch):
    n, hidden = x.shape
    hc = heads * out_ch
    assert w_lin.shape == (hidden, hc)
    # Pad rows to a multiple of 16 (bf16 sublane tile) and pick a destination-row tile.
    n16 = _round_up(n, 16)
    tile_m = min(128, n16)
    n_pad = _round_up(n16, tile_m)
    x_p = jnp.pad(x, ((0, n_pad - n), (0, 0)))
    adj_p = jnp.pad(adj_bias, ((0, n_pad - n), (0, n_pad - n)), constant_values=NEG_BIAS)

    # Packed attention matrix: block-diagonal per head, [hc, 2*heads].
    attp = jnp.zeros((hc, 2 * heads), jnp.float32)
    for h in range(heads):
        attp = attp.at[h * out_ch:(h + 1) * out_ch, h].set(att_src[h])
        attp = attp.at[h * out_ch:(h + 1) * out_ch, heads + h].set(att_dst[h])
    fold = jnp.tile(jnp.eye(out_ch, dtype=jnp.float32), (heads, 1)) / heads    # [hc, out_ch]

    kern = functools.partial(_gat_kernel, heads=heads, out_ch=out_ch, neg_slope=NEG_SLOPE)
    out = pl.pallas_call(
        kern,
        out_shape=jax.ShapeDtypeStruct((n_pad, out_ch), jnp.float32),
        grid=(n_pad // tile_m,),
        in_specs=[
            pl.BlockSpec((n_pad, hidden), lambda i: (0, 0)),     # x, all source rows (resident)
            pl.BlockSpec((tile_m, hidden), lambda i: (i, 0)),    # x, destination row tile
            pl.BlockSpec((hidden, hc), lambda i: (0, 0)),        # packed W  [32, 128]
            pl.BlockSpec((hc, 2 * heads), lambda i: (0, 0)),     # packed attention matrix
            pl.BlockSpec((hc, out_ch), lambda i: (0, 0)),        # head-mean fold matrix
            pl.BlockSpec((tile_m, n_pad), lambda i: (i, 0)),     # bf16 additive adjacency bias tile
            pl.BlockSpec((1, out_ch), lambda i: (0, 0)),         # output bias row
        ],
        out_specs=pl.BlockSpec((tile_m, out_ch), lambda i: (i, 0)),
        compiler_params=pltpu.CompilerParams(
            dimension_semantics=("parallel",),                   # dst-row tiles independent (v7x megacore)
            vmem_limit_bytes=48 * 1024 * 1024),
    )(x_p, x_p, w_lin, attp, fold, adj_p, eff_bias.reshape(1, -1))
    return out[:n]


# --------------------------------------------------------------------------- glue
def dense_adj_bias(edge_index, num_rows):
    """Additive attention bias: 0 where edge j->i exists (or self-loop), -1e30 otherwise (bf16)."""
    src, dst = edge_index[0], edge_index[1]
    b = jnp.full((num_rows, num_rows), NEG_BIAS, jnp.float32)
    b = b.at[dst, src].set(0.0)
    idx = jnp.arange(num_rows)
    b = b.at[idx, idx].set(0.0)                  # GATConv add_self_loops=True (guarantees no NaN row)
    return b.astype(jnp.bfloat16)


def dense_adj_mask(edge_index, num_rows):        # 0/1 mask, used by the pure-JAX reference only
    src, dst = edge_index[0], edge_index[1]
    m = jnp.zeros((num_rows, num_rows), jnp.float32)
    m = m.at[dst, src].set(1.0)
    idx = jnp.arange(num_rows)
    return m.at[idx, idx].set(1.0)


def init_params(key, hidden=HIDDEN, heads=HEADS):
    ks = jax.random.split(key, 8)
    s = 0.1
    p = {}
    # edge_fc: Linear(3*hidden, hidden)
    p["edge_fc_w"] = s * jax.random.normal(ks[0], (3 * hidden, hidden), jnp.float32)
    p["edge_fc_b"] = s * jax.random.normal(ks[1], (hidden,), jnp.float32)
    # ee_gat: GATLayer -> GATConv(hidden, hidden, heads, concat=False) + bias (zeros)
    p["ee_w"] = s * jax.random.normal(ks[2], (hidden, heads * hidden), jnp.float32)
    p["ee_att_src"] = s * jax.random.normal(ks[3], (heads, hidden), jnp.float32)
    p["ee_att_dst"] = s * jax.random.normal(ks[4], (heads, hidden), jnp.float32)
    p["ee_gat_bias"] = jnp.zeros((hidden,), jnp.float32)
    p["ee_layer_bias"] = jnp.zeros((hidden,), jnp.float32)
    # en_gat: SGATLayer(combine='mean') -> GATConv(hidden, hidden, heads, concat=True) + bias (zeros)
    p["en_w"] = s * jax.random.normal(ks[5], (hidden, heads * hidden), jnp.float32)
    p["en_att_src"] = s * jax.random.normal(ks[6], (heads, hidden), jnp.float32)
    p["en_att_dst"] = s * jax.random.normal(ks[7], (heads, hidden), jnp.float32)
    p["en_gat_bias"] = jnp.zeros((heads * hidden,), jnp.float32)
    p["en_layer_bias"] = jnp.zeros((hidden,), jnp.float32)
    return p


def spatial_conv_forward(params, x, edge_index, edge_attr, dist_feat, dist_feat_order,
                         edge_to_edge_index, hidden=HIDDEN, heads=HEADS):
    # eval mode: dropout is identity.  edge_dim == hidden_size -> edge_dim_proj is None.
    num_nodes, num_edges = x.shape[0], edge_index.shape[1]
    srcs, dsts = edge_index[0], edge_index[1]

    feat_h = jnp.concatenate([x[srcs], x[dsts], dist_feat_order], axis=1)          # [E, 3H]
    edge_feat = linear_relu(feat_h, params["edge_fc_w"], params["edge_fc_b"])       # [E, H]
    node_edge_feat = jnp.concatenate([x, edge_feat], axis=0)                        # [N+E, H]
    ntot = num_nodes + num_edges

    # ee_gat over the edge-to-edge graph (concat=False => mean over heads)
    ee_adj = dense_adj_bias(edge_to_edge_index, ntot)
    ee_bias = params["ee_gat_bias"] + params["ee_layer_bias"]
    node_edge_feat = gat_layer(node_edge_feat, params["ee_w"], params["ee_att_src"],
                               params["ee_att_dst"], ee_adj, ee_bias,
                               heads=heads, out_ch=hidden)

    # en_gat (SGATLayer combine='mean'): GATConv concat=True then mean over heads;
    # mean(out + bias_concat) == mean(out) + per-head mean of the concat bias.
    # edge_index only connects node rows (< num_nodes); the E edge rows have only the GATConv
    # self-loop, so their softmax is identity -> out_row = mean_h(x_row @ W_h).  Run dense
    # attention only on the N x N node block and a head-mean linear on the edge rows (~9x less work).
    # TODO(synk): dist_feat is passed as edge_attr but SGATLayer was built with edge_dim=None,
    # so GATConv has no lin_edge and ignores it — matches the PyTorch module as written.
    en_bias = (jnp.mean(params["en_gat_bias"].reshape(heads, hidden), axis=0)
               + params["en_layer_bias"])
    node_adj = dense_adj_bias(edge_index, num_nodes)
    node_out = gat_layer(node_edge_feat[:num_nodes], params["en_w"], params["en_att_src"],
                         params["en_att_dst"], node_adj, en_bias,
                         heads=heads, out_ch=hidden)
    w_mean = jnp.mean(params["en_w"].reshape(hidden, heads, hidden), axis=1)        # mean_h(W_h)
    edge_out = linear_relu(node_edge_feat[num_nodes:], w_mean, en_bias)
    return jnp.concatenate([node_out, edge_out], axis=0)                            # [N+E, H]


# --------------------------------------------------------------------------- pure-JAX reference
def _gat_ref(x, w_lin, att_src, att_dst, mask, bias, heads, out_ch):
    hidden = x.shape[1]
    w3 = w_lin.reshape(hidden, heads, out_ch).transpose(1, 0, 2)
    acc = jnp.zeros((x.shape[0], out_ch), jnp.float32)
    m = mask > 0
    for h in range(heads):
        xw_h = x @ w3[h]
        a_s = jnp.sum(xw_h * att_src[h][None, :], axis=-1, keepdims=True)
        a_d = jnp.sum(xw_h * att_dst[h][None, :], axis=-1, keepdims=True)
        e = a_d + a_s.T
        e = jnp.where(e > 0, e, NEG_SLOPE * e)
        e = jnp.where(m, e, NEG_BIAS)
        acc = acc + jax.nn.softmax(e, axis=1) @ xw_h
    return jnp.maximum(acc / heads + bias[None, :], 0.0)


def _reference_forward(params, x, edge_index, dist_feat_order, edge_to_edge_index,
                       hidden=HIDDEN, heads=HEADS):
    num_nodes, num_edges = x.shape[0], edge_index.shape[1]
    srcs, dsts = edge_index[0], edge_index[1]
    feat_h = jnp.concatenate([x[srcs], x[dsts], dist_feat_order], axis=1)
    edge_feat = jnp.maximum(feat_h @ params["edge_fc_w"] + params["edge_fc_b"], 0.0)
    nef = jnp.concatenate([x, edge_feat], axis=0)
    ntot = num_nodes + num_edges
    nef = _gat_ref(nef, params["ee_w"], params["ee_att_src"], params["ee_att_dst"],
                   dense_adj_mask(edge_to_edge_index, ntot),
                   params["ee_gat_bias"] + params["ee_layer_bias"], heads, hidden)
    en_bias = (jnp.mean(params["en_gat_bias"].reshape(heads, hidden), axis=0)
               + params["en_layer_bias"])
    nef = _gat_ref(nef, params["en_w"], params["en_att_src"], params["en_att_dst"],
                   dense_adj_mask(edge_index, ntot), en_bias, heads, hidden)
    return nef


# --------------------------------------------------------------------------- main
if __name__ == "__main__":
    key = jax.random.PRNGKey(0)
    kp, kx, kdf, kdfo, kea = jax.random.split(key, 5)

    N, H = 72, HIDDEN
    # bidirectional ring graph over nodes (exercises grid > 1 in the ee GAT layer)
    base = np.arange(N)
    src = np.concatenate([base, (base + 1) % N])
    dst = np.concatenate([(base + 1) % N, base])
    edge_index = jnp.asarray(np.stack([src, dst]), dtype=jnp.int32)                 # [2, 144]
    E = edge_index.shape[1]

    # edge-to-edge graph over the (N + E) node/edge rows: each edge-row connects to its endpoints
    ee_src, ee_dst = [], []
    for e in range(E):
        s, d = int(src[e]), int(dst[e])
        ee_src += [s, d, N + e, N + e]
        ee_dst += [N + e, N + e, s, d]
    edge_to_edge_index = jnp.asarray(np.stack([ee_src, ee_dst]), dtype=jnp.int32)   # [2, 4E]

    x = jax.random.normal(kx, (N, H), jnp.float32)
    edge_attr = jax.random.normal(kea, (E, H), jnp.float32)       # read but unused (as in PyTorch)
    dist_feat = jax.random.normal(kdf, (E, H), jnp.float32)
    dist_feat_order = jax.random.normal(kdfo, (E, H), jnp.float32)

    params = init_params(kp)
    out = spatial_conv_forward(params, x, edge_index, edge_attr, dist_feat,
                               dist_feat_order, edge_to_edge_index)
    out = jax.block_until_ready(out)
    assert out.shape == (N + E, H)

    ref = _reference_forward(params, x, edge_index, dist_feat_order, edge_to_edge_index)
    np.testing.assert_allclose(np.asarray(out), np.asarray(ref), rtol=5e-3, atol=5e-3)
    print("KERNEL_OK")
</pallas_src>

<mosaic_0001>
module attributes {stable_mosaic.version = 11 : i64} {
  func.func @_linear_relu_kernel(%arg0: memref<144x96xf32, #tpu.memory_space<vmem>>, %arg1: memref<96x32xf32, #tpu.memory_space<vmem>>, %arg2: memref<1x32xf32, #tpu.memory_space<vmem>>, %arg3: memref<144x32xf32, #tpu.memory_space<vmem>>) attributes {dimension_semantics = [], scalar_prefetch = 0 : i64, scratch_operands = 0 : i64, tpu.core_type = #tpu.core_type<tc>} {
    %c0 = arith.constant 0 : index
    %c0_0 = arith.constant 0 : index
    %0 = vector.load %arg0[%c0, %c0_0] : memref<144x96xf32, #tpu.memory_space<vmem>>, vector<144x96xf32>
    %c0_1 = arith.constant 0 : index
    %c0_2 = arith.constant 0 : index
    %1 = vector.load %arg1[%c0_1, %c0_2] : memref<96x32xf32, #tpu.memory_space<vmem>>, vector<96x32xf32>
    %cst = arith.constant dense<0.000000e+00> : vector<144x32xf32>
    %2 = tpu.matmul %0, %1, %cst {dimension_numbers = #tpu.dot_dimension_numbers<[1], [0], [0], [1], [0, 0, 1, 1], [], []>} : vector<144x96xf32>, vector<96x32xf32>, vector<144x32xf32> -> vector<144x32xf32>
    %c0_3 = arith.constant 0 : index
    %c0_4 = arith.constant 0 : index
    %3 = vector.load %arg2[%c0_3, %c0_4] : memref<1x32xf32, #tpu.memory_space<vmem>>, vector<1x32xf32>
    %4 = vector.broadcast %3 : vector<1x32xf32> to vector<144x32xf32>
    %5 = arith.addf %2, %4 : vector<144x32xf32>
    %cst_5 = arith.constant 0.000000e+00 : f32
    %6 = vector.broadcast %cst_5 : f32 to vector<144x32xf32>
    %7 = arith.maximumf %5, %6 : vector<144x32xf32>
    %c0_6 = arith.constant 0 : index
    %c0_7 = arith.constant 0 : index
    %8 = vector.load %arg3[%c0_6, %c0_7] : memref<144x32xf32, #tpu.memory_space<vmem>>, vector<144x32xf32>
    tpu.vector_store %arg3[%c0_6, %c0_7], %7 {strides = array<i32>} : memref<144x32xf32, #tpu.memory_space<vmem>>, vector<144x32xf32>,
    return
  }
}

</mosaic_0001>

<bundles_post_ra>
// kernel: tpu_custom_call.1
= control target key start
LH: loop header
LB: loop body
LE: loop exit
PB: predicated region body
PF: predicated region fallthrough
CT: control target
= control target key end

     0   :  { %8 = vsyncpa [#allocation3], 0  ;;  %s316_s15 = smov [#allocation2]   ;;  %s317_s17 = smov 128   ;;  %s491_s0 = inlined_call_operand.hbm [shape: f32[144,96], index: 0, kind: input, shape index: {}]   ;;  %s492_s1 = inlined_call_operand.vmem [shape: f32[96,32], index: 1, kind: input, shape index: {}]   ;;  %s493_s2 = inlined_call_operand.vmem [shape: f32[1,32], index: 2, kind: input, shape index: {}]   ;;  %s494_s3 = inlined_call_operand.vmem [shape: f32[144,32], index: 3, kind: output, shape index: {}]  }
   0x1   :  { %s13_s14 = sshll.u32 %s491_s0, 4  ;;  %s15_s16 = sshll.u32 %s316_s15, 4  ;;  %s14_s14 = int_to_ptr.hbm [resolvable:$true] %s13_s14  ;;  %s16_s16 = int_to_ptr.vmem [resolvable:$true] %s15_s16 }
   0x2   :  { %s318_s18 = smov 8  }
   0x3   :  { %21 = dma.hbm_to_vmem [thread:$0]  %s14_s14, 2304, %s16_s16, [#allocation3], %s317_s17, %s317_s17, %s318_s18  }
   0x4   :  { %314 = dma.done.wait [#allocation3], 2304  }
   0x5   :  { %315 = vsyncadd [#allocation3], 4294964992  ;;  %v59_v0 = vld [vmem:[%s492_s1 + $0x58] sm:$0xff]  ;;  %v58_v1 = vld [vmem:[%s492_s1 + $0x50] sm:$0xff]  ;;  %vm64_vm0 = vcmask 785408   ;;  %vm208_vm1 = vcmask 261120  }
   0x6   :  { %251 = vmatpush.msra.mxu2 %v59_v0  ;;  %252 = vmatpush.msra.mxu3 %v59_v0  ;;  %v57_v2 = vld [vmem:[%s492_s1 + $0x48] sm:$0xff]  ;;  %v56_v3 = vld [vmem:[%s492_s1 + $0x40] sm:$0xff]  ;;  %v55_v4 = vld [vmem:[%s492_s1 + $0x38] sm:$0xff] }
   0x7   :  { %123 = vmatpush.msra.mxu0 %v59_v0  ;;  %250 = vmatpush.msra.mxu1 %v59_v0  ;;  %v54_v5 = vld [vmem:[%s492_s1 + $0x30] sm:$0xff]  ;;  %v53_v6 = vld [vmem:[%s492_s1 + $0x28] sm:$0xff]  ;;  %v52_v7 = vld [vmem:[%s492_s1 + $0x20] sm:$0xff] }
   0x8   :  { %254 = vmatpush.msra.mxu2 %v58_v1  ;;  %255 = vmatpush.msra.mxu3 %v58_v1  ;;  %v51_v8 = vld [vmem:[%s492_s1 + $0x18] sm:$0xff]  ;;  %v50_v9 = vld [vmem:[%s492_s1 + $0x10] sm:$0xff]  ;;  %v49_v10 = vld [vmem:[%s492_s1 + $0x8] sm:$0xff] }
   0x9   :  { %124 = vmatpush.msra.mxu0 %v58_v1  ;;  %253 = vmatpush.msra.mxu1 %v58_v1  ;;  %v48_v11 = vld [vmem:[%s492_s1] sm:$0xff]  ;;  %v43_v13 = vld [vmem:[#allocation2 + $0x68] sm:$0xff]  ;;  %v44_v17 = vld [vmem:[#allocation2 + $0x70] sm:$0xff] }
   0xa   :  { %257 = vmatpush.msra.mxu2 %v57_v2  ;;  %258 = vmatpush.msra.mxu3 %v57_v2  ;;  %v38_v12 = vld [vmem:[#allocation2 + $0x40] sm:$0xff]  ;;  %v39_v16 = vld [vmem:[#allocation2 + $0x48] sm:$0xff]  ;;  %v40_v20 = vld [vmem:[#allocation2 + $0x50] sm:$0xff] }
   0xb   :  { %125 = vmatpush.msra.mxu0 %v57_v2  ;;  %256 = vmatpush.msra.mxu1 %v57_v2  ;;  %v30_v14 = vld [vmem:[#allocation2] sm:$0xff]  ;;  %v31_v18 = vld [vmem:[#allocation2 + $0x8] sm:$0xff]  ;;  %v45_v21 = vld [vmem:[#allocation2 + $0x78] sm:$0xff] }
   0xc   :  { %260 = vmatpush.msra.mxu2 %v56_v3  ;;  %261 = vmatpush.msra.mxu3 %v56_v3  ;;  %v34_v15 = vld [vmem:[#allocation2 + $0x20] sm:$0xff]  ;;  %v35_v19 = vld [vmem:[#allocation2 + $0x28] sm:$0xff]  ;;  %v32_v22 = vld [vmem:[#allocation2 + $0x10] sm:$0xff] }
   0xd   :  { %126 = vmatpush.msra.mxu0 %v56_v3  ;;  %259 = vmatpush.msra.mxu1 %v56_v3  ;;  %v36_v23 = vld [vmem:[#allocation2 + $0x30] sm:$0xff]  ;;  %v41_v24 = vld [vmem:[#allocation2 + $0x58] sm:$0xff]  ;;  %v46_v25 = vld [vmem:[#allocation2 + $0x80] sm:$0xff] }
   0xe   :  { %263 = vmatpush.msra.mxu2 %v55_v4  ;;  %264 = vmatpush.msra.mxu3 %v55_v4  ;;  %v33_v26 = vld [vmem:[#allocation2 + $0x18] sm:$0xff]  ;;  %v42_v28 = vld [vmem:[#allocation2 + $0x60] sm:$0xff]  ;;  %v47_v29 = vld [vmem:[#allocation2 + $0x88] sm:$0xff] }
   0xf   :  { %127 = vmatpush.msra.mxu0 %v55_v4  ;;  %262 = vmatpush.msra.mxu1 %v55_v4  ;;  %v37_v27 = vld [vmem:[#allocation2 + $0x38] sm:$0xff]  ;;  %v399_v30 = vld [vmem:[%s493_s2] ss:$0 sm:$0xff] }
  0x10   :  { %266 = vmatpush.msra.mxu2 %v54_v5  ;;  %267 = vmatpush.msra.mxu3 %v54_v5 }
  0x11   :  { %128 = vmatpush.msra.mxu0 %v54_v5  ;;  %265 = vmatpush.msra.mxu1 %v54_v5 }
  0x12   :  { %269 = vmatpush.msra.mxu2 %v53_v6  ;;  %270 = vmatpush.msra.mxu3 %v53_v6 }
  0x13   :  { %129 = vmatpush.msra.mxu0 %v53_v6  ;;  %268 = vmatpush.msra.mxu1 %v53_v6 }
  0x14   :  { %272 = vmatpush.msra.mxu2 %v52_v7  ;;  %273 = vmatpush.msra.mxu3 %v52_v7 }
  0x15   :  { %130 = vmatpush.msra.mxu0 %v52_v7  ;;  %271 = vmatpush.msra.mxu1 %v52_v7 }
  0x16   :  { %275 = vmatpush.msra.mxu2 %v51_v8  ;;  %276 = vmatpush.msra.mxu3 %v51_v8 }
  0x17   :  { %131 = vmatpush.msra.mxu0 %v51_v8  ;;  %274 = vmatpush.msra.mxu1 %v51_v8 }
  0x18   :  { %278 = vmatpush.msra.mxu2 %v50_v9  ;;  %279 = vmatpush.msra.mxu3 %v50_v9 }
  0x19   :  { %132 = vmatpush.msra.mxu0 %v50_v9  ;;  %277 = vmatpush.msra.mxu1 %v50_v9 }
  0x1a   :  { %281 = vmatpush.msra.mxu2 %v49_v10  ;;  %282 = vmatpush.msra.mxu3 %v49_v10 }
  0x1b   :  { %133 = vmatpush.msra.mxu0 %v49_v10  ;;  %280 = vmatpush.msra.mxu1 %v49_v10 }
  0x1c   :  { %284 = vmatpush.msra.mxu2 %v48_v11  ;;  %285 = vmatpush.msra.mxu3 %v48_v11 }
  0x1d   :  { %240 = vmatmul.msk.f32.vlgmr.msra.gmra.mxu2 %vm64_vm0, %v38_v12  ;;  %245 = vmatmul.msk.f32.vlgmr.msra.gmra.mxu3 %vm64_vm0, %v43_v13 }
  0x1e   :  { %134 = vmatpush.msra.mxu0 %v48_v11  ;;  %283 = vmatpush.msra.mxu1 %v48_v11 }
  0x1f   :  { %232 = vmatmul.msk.f32.vlgmr.msra.gmra.mxu0 %vm64_vm0, %v30_v14  ;;  %236 = vmatmul.msk.f32.vlgmr.msra.gmra.mxu1 %vm64_vm0, %v34_v15 }
  0x25   :  { %241 = vmatmul.msk.f32.gmra.mxu2 %vm64_vm0, %v39_v16  ;;  %246 = vmatmul.msk.f32.gmra.mxu3 %vm64_vm0, %v44_v17 }
  0x27   :  { %233 = vmatmul.msk.f32.gmra.mxu0 %vm64_vm0, %v31_v18  ;;  %237 = vmatmul.msk.f32.gmra.mxu1 %vm64_vm0, %v35_v19 }
  0x2d   :  { %242 = vmatmul.msk.f32.gmra.mxu2 %vm64_vm0, %v40_v20  ;;  %247 = vmatmul.msk.f32.gmra.mxu3 %vm64_vm0, %v45_v21 }
  0x2f   :  { %234 = vmatmul.msk.f32.gmra.mxu0 %vm64_vm0, %v32_v22  ;;  %238 = vmatmul.msk.f32.gmra.mxu1 %vm64_vm0, %v36_v23 }
  0x35   :  { %243 = vmatmul.msk.f32.gmra.mxu2 %vm64_vm0, %v41_v24  ;;  %248 = vmatmul.msk.f32.gmra.mxu3 %vm64_vm0, %v46_v25 }
  0x37   :  { %235 = vmatmul.msk.f32.gmra.mxu0 %vm64_vm0, %v33_v26  ;;  %239 = vmatmul.msk.f32.gmra.mxu1 %vm64_vm0, %v37_v27 }
  0x3d   :  { %244 = vmatmul.msk.f32.gmra.mxu2 %vm64_vm0, %v42_v28  ;;  %249 = vmatmul.msk.f32.gmra.mxu3 %vm64_vm0, %v47_v29 }
  0x9c   :  { %v136_v31 = vpop.f32.mrf.mxu0  ;;  %v148_v32 = vpop.f32.mrf.mxu1 }
  0x9d   :  { %v137_v33 = vadd.f32 %v399_v30, %v136_v31  ;;  %v149_v34 = vadd.f32 %v399_v30, %v148_v32 }
  0x9f   :  { %v190_v35 = vmax.f32 %v137_v33, 0.0  ;;  %v194_v36 = vmax.f32 %v149_v34, 0.0 }
  0xa0   :  { %v160_v37 = vpop.f32.mrf.mxu2  ;;  %v175_v38 = vpop.f32.mrf.mxu3 }
  0xa1   :  { %v161_v39 = vadd.f32 %v399_v30, %v160_v37  ;;  %v176_v40 = vadd.f32 %v399_v30, %v175_v38  ;;  %209 = vst.msk [vmem:[%s494_s3] sm:$0xff] %vm208_vm1, %v190_v35 }
  0xa2   :  { %213 = vst.msk [vmem:[%s494_s3 + $0x20] sm:$0xff] %vm208_vm1, %v194_v36 }
  0xa3   :  { %v198_v41 = vmax.f32 %v161_v39, 0.0  ;;  %v203_v42 = vmax.f32 %v176_v40, 0.0 }
  0xa4   :  { %v139_v43 = vpop.f32.mrf.mxu0  ;;  %v151_v44 = vpop.f32.mrf.mxu1 }
  0xa5   :  { %217 = vst.msk [vmem:[%s494_s3 + $0x40] sm:$0xff] %vm208_vm1, %v198_v41  ;;  %v140_v45 = vadd.f32 %v399_v30, %v139_v43  ;;  %v152_v46 = vadd.f32 %v399_v30, %v151_v44 }
  0xa6   :  { %222 = vst.msk [vmem:[%s494_s3 + $0x68] sm:$0xff] %vm208_vm1, %v203_v42 }
  0xa7   :  { %v191_v47 = vmax.f32 %v140_v45, 0.0  ;;  %v195_v48 = vmax.f32 %v152_v46, 0.0 }
  0xa8   :  { %v163_v49 = vpop.f32.mrf.mxu2  ;;  %v178_v50 = vpop.f32.mrf.mxu3 }
  0xa9   :  { %v164_v51 = vadd.f32 %v399_v30, %v163_v49  ;;  %v179_v52 = vadd.f32 %v399_v30, %v178_v50  ;;  %210 = vst.msk [vmem:[%s494_s3 + $0x8] sm:$0xff] %vm208_vm1, %v191_v47 }
  0xaa   :  { %214 = vst.msk [vmem:[%s494_s3 + $0x28] sm:$0xff] %vm208_vm1, %v195_v48 }
  0xab   :  { %v199_v53 = vmax.f32 %v164_v51, 0.0  ;;  %v204_v54 = vmax.f32 %v179_v52, 0.0 }
  0xac   :  { %v142_v55 = vpop.f32.mrf.mxu0  ;;  %v154_v56 = vpop.f32.mrf.mxu1 }
  0xad   :  { %218 = vst.msk [vmem:[%s494_s3 + $0x48] sm:$0xff] %vm208_vm1, %v199_v53  ;;  %v143_v57 = vadd.f32 %v399_v30, %v142_v55  ;;  %v155_v58 = vadd.f32 %v399_v30, %v154_v56 }
  0xae   :  { %223 = vst.msk [vmem:[%s494_s3 + $0x70] sm:$0xff] %vm208_vm1, %v204_v54 }
  0xaf   :  { %v192_v59 = vmax.f32 %v143_v57, 0.0  ;;  %v196_v60 = vmax.f32 %v155_v58, 0.0 }
  0xb0   :  { %v166_v61 = vpop.f32.mrf.mxu2  ;;  %v181_v62 = vpop.f32.mrf.mxu3 }
  0xb1   :  { %v167_v63 = vadd.f32 %v399_v30, %v166_v61  ;;  %v182_v0 = vadd.f32 %v399_v30, %v181_v62  ;;  %211 = vst.msk [vmem:[%s494_s3 + $0x10] sm:$0xff] %vm208_vm1, %v192_v59 }
  0xb2   :  { %215 = vst.msk [vmem:[%s494_s3 + $0x30] sm:$0xff] %vm208_vm1, %v196_v60 }
  0xb3   :  { %v200_v1 = vmax.f32 %v167_v63, 0.0  ;;  %v205_v2 = vmax.f32 %v182_v0, 0.0 }
  0xb4   :  { %v145_v3 = vpop.f32.mrf.mxu0  ;;  %v157_v4 = vpop.f32.mrf.mxu1 }
  0xb5   :  { %219 = vst.msk [vmem:[%s494_s3 + $0x50] sm:$0xff] %vm208_vm1, %v200_v1  ;;  %v146_v5 = vadd.f32 %v399_v30, %v145_v3  ;;  %v158_v6 = vadd.f32 %v399_v30, %v157_v4 }
  0xb6   :  { %224 = vst.msk [vmem:[%s494_s3 + $0x78] sm:$0xff] %vm208_vm1, %v205_v2 }
  0xb7   :  { %v193_v7 = vmax.f32 %v146_v5, 0.0  ;;  %v197_v8 = vmax.f32 %v158_v6, 0.0 }
  0xb8   :  { %v169_v9 = vpop.f32.mrf.mxu2  ;;  %v184_v10 = vpop.f32.mrf.mxu3 }
  0xb9   :  { %v170_v11 = vadd.f32 %v399_v30, %v169_v9  ;;  %v185_v12 = vadd.f32 %v399_v30, %v184_v10  ;;  %212 = vst.msk [vmem:[%s494_s3 + $0x18] sm:$0xff] %vm208_vm1, %v193_v7 }
  0xba   :  { %216 = vst.msk [vmem:[%s494_s3 + $0x38] sm:$0xff] %vm208_vm1, %v197_v8 }
  0xbb   :  { %v201_v13 = vmax.f32 %v170_v11, 0.0  ;;  %v206_v14 = vmax.f32 %v185_v12, 0.0 }
  0xbd   :  { %220 = vst.msk [vmem:[%s494_s3 + $0x58] sm:$0xff] %vm208_vm1, %v201_v13 }
  0xbe   :  { %225 = vst.msk [vmem:[%s494_s3 + $0x80] sm:$0xff] %vm208_vm1, %v206_v14 }
  0xc0   :  { %v172_v15 = vpop.f32.mrf.mxu2  ;;  %v187_v16 = vpop.f32.mrf.mxu3 }
  0xc1   :  { %v173_v17 = vadd.f32 %v399_v30, %v172_v15  ;;  %v188_v18 = vadd.f32 %v399_v30, %v187_v16 }
  0xc3   :  { %v202_v19 = vmax.f32 %v173_v17, 0.0  ;;  %v207_v20 = vmax.f32 %v188_v18, 0.0 }
  0xc5   :  { %221 = vst.msk [vmem:[%s494_s3 + $0x60] sm:$0xff] %vm208_vm1, %v202_v19 }
  0xc6   :  { %226 = vst.msk [vmem:[%s494_s3 + $0x88] sm:$0xff] %vm208_vm1, %v207_v20 }
  0xc7   :  { %231 = vsyncpa [#allocation3], 1 }

</bundles_post_ra>
